<compile_context>
chip_gen: v7x
topology: tpu7x:2x2x1
jax: 0.10.0
libtpu: 0.0.40
codegen_flags: <defaults>
</compile_context>

<pallas_src>
import functools

import jax
import jax.numpy as jnp
from jax import lax
from jax.experimental import pallas as pl
from jax.experimental.pallas import tpu as pltpu


def _ce_tile_kernel(logits_ref, label_ref, out_ref, *, tm, n_valid):
    """One row-tile of cross entropy; writes the tile's partial loss sum."""
    i = pl.program_id(0)

    x_raw = logits_ref[...]                               # (TM, C) source dtype
    lbl = label_ref[...]                                   # (TM, 1) int32

    # Numerically-stable shifted log-sum-exp in f32.
    x = x_raw.astype(jnp.float32)                          # (TM, C)
    m = jnp.max(x, axis=-1, keepdims=True)                 # (TM, 1)
    lse = jnp.log(jnp.sum(jnp.exp(x - m), axis=-1, keepdims=True))  # (TM, 1)

    # Gather the target logit with a single select in the *source* dtype
    # (halves the second (TM, C) pass for bf16); only the (TM, 1) selected
    # column is upcast.  Exactly one element per row is non-zero, so the
    # narrow-dtype sum is exact.
    cols = lax.broadcasted_iota(jnp.int32, x_raw.shape, 1)  # (TM, C)
    tgt = jnp.sum(jnp.where(cols == lbl, x_raw, jnp.zeros_like(x_raw)),
                  axis=-1, keepdims=True).astype(jnp.float32)  # (TM, 1)

    # lse is of the shifted values, so per-example loss = lse - (tgt - m).
    per_example = (lse + m) - tgt                          # (TM, 1)

    # Mask rows beyond N (undefined data in the partial last block).  Keep the
    # select *after* lse so NaN/Inf from garbage rows cannot propagate.
    rows = i * tm + lax.broadcasted_iota(jnp.int32, per_example.shape, 0)
    per_example = jnp.where(rows < n_valid, per_example, 0.0)

    partial = jnp.sum(per_example)
    # Lane-dense (1, 128) store; wrapper reads lane 0 of each tile row.
    out_ref[...] = jnp.full(out_ref.shape, partial, dtype=jnp.float32)


def _vmem_capacity_bytes():
    """Physical VMEM of the current chip; conservative 64 MiB fallback."""
    try:
        info = pltpu.get_tpu_info()
        cap = getattr(info, "vmem_capacity_bytes", None)
        if cap:
            return int(cap)
    except Exception:
        pass
    return 64 * 1024 * 1024  # v7x-safe fallback


def _round_up8(x):
    return ((int(x) + 7) // 8) * 8


def ce_loss(logits, label, *, tm=None):
    """Cross-entropy loss (mean over batch), matching nn.CrossEntropyLoss.

    logits: (N, C) float array of unnormalized scores (f32 or bf16).
    label:  (N,)  integer class indices in [0, C).
    Returns {'loss': scalar, 'ce_loss': scalar} like the PyTorch module.
    """
    # TODO(synk): ignore_index / class weights of nn.CrossEntropyLoss are not
    # handled (module uses defaults only).
    n, c = logits.shape
    itemsize = jnp.dtype(logits.dtype).itemsize

    vmem_cap = _vmem_capacity_bytes()
    # ~64 MiB scoped limit on 128 MiB parts (v5e/v6e), ~40 MiB on 64 MiB v7x.
    vmem_limit = int(min(64 * 1024 * 1024, (vmem_cap * 5) // 8))

    if tm is None:
        # Per-tile-row VMEM footprint:
        #   2x double-buffered logits DMA block     : 2 * C * itemsize
        #   ~4 f32 (TM, C) in-kernel intermediates  : 4 * C * 4
        #     (upcast x, shifted/exp temps, int32 iota)
        #   label block lane-pads (TM,1)->(TM,128) i32, double-buffered.
        bytes_per_row = 2 * c * itemsize + 4 * c * 4 + 2 * 128 * 4
        budget = (vmem_limit * 3) // 4  # headroom for output block / misc
        tm = budget // bytes_per_row
        if tm < 8:
            # TODO(synk): vocab-scale C needs a class-axis grid dim with an
            # online LSE + running target accumulation; fail loudly for now.
            raise NotImplementedError(
                f"num_classes={c} too large for the single-row-tile CE kernel "
                f"(minimum 8-row tile exceeds the {budget} byte VMEM budget).")
        tm = max(8, (tm // 8) * 8)
        # Don't over-allocate past the batch.
        tm = min(tm, max(8, _round_up8(n)))
        # Keep >= 2 grid steps whenever possible so both v7x TensorCores get
        # work (grid axis is the only thing that shards across them).
        if n > 8:
            tm = min(tm, max(8, _round_up8(-(-n // 2))))
    tm = int(tm)

    n_tiles = int(pl.cdiv(n, tm))

    # Labels are tiny; just reshape (no padding — partial last block is fine,
    # garbage labels in the tail are masked out via the row select).
    label2d = label.astype(jnp.int32).reshape(n, 1)

    kernel = functools.partial(_ce_tile_kernel, tm=tm, n_valid=n)

    partials = pl.pallas_call(
        kernel,
        out_shape=jax.ShapeDtypeStruct((n_tiles, 128), jnp.float32),
        grid_spec=pltpu.PrefetchScalarGridSpec(
            num_scalar_prefetch=0,
            grid=(n_tiles,),
            in_specs=[
                pl.BlockSpec((tm, c), lambda i: (i, 0)),
                pl.BlockSpec((tm, 1), lambda i: (i, 0)),
            ],
            out_specs=pl.BlockSpec((1, 128), lambda i: (i, 0)),
        ),
        compiler_params=pltpu.CompilerParams(
            dimension_semantics=("parallel",),
            vmem_limit_bytes=vmem_limit,
        ),
    )(logits, label2d)

    # Single reduction + single /N in the wrapper.
    loss = jnp.sum(partials[:, 0]) / jnp.float32(n)
    return {'loss': loss, 'ce_loss': loss}


if __name__ == "__main__":
    key = jax.random.PRNGKey(0)
    k_logits, k_label = jax.random.split(key)

    # Small shapes: batch=8, num_classes=32.
    N, C = 8, 32
    logits = jax.random.normal(k_logits, (N, C), dtype=jnp.float32)
    label = jax.random.randint(k_label, (N,), 0, C, dtype=jnp.int32)

    out = ce_loss(logits, label)
    jax.block_until_ready(out['loss'])

    # Sanity check against pure-JAX reference.
    ref = -jnp.mean(
        jax.nn.log_softmax(logits, axis=-1)[jnp.arange(N), label])
    assert jnp.allclose(out['loss'], ref, atol=1e-5, rtol=1e-5), (
        out['loss'], ref)
    assert jnp.allclose(out['ce_loss'], out['loss'])

    # Exercise ragged N (partial last block, no jnp.pad) and the >=2-tile path.
    N2 = 13
    logits2 = jax.random.normal(k_logits, (N2, C), dtype=jnp.float32)
    label2 = jax.random.randint(k_label, (N2,), 0, C, dtype=jnp.int32)
    out2 = ce_loss(logits2, label2)
    jax.block_until_ready(out2['loss'])
    ref2 = -jnp.mean(
        jax.nn.log_softmax(logits2, axis=-1)[jnp.arange(N2), label2])
    assert jnp.allclose(out2['loss'], ref2, atol=1e-5, rtol=1e-5), (
        out2['loss'], ref2)

    print("KERNEL_OK")
</pallas_src>

<mosaic_0001>
module attributes {stable_mosaic.version = 11 : i64} {
  func.func @_ce_tile_kernel(%arg0: i32, %arg1: memref<8x32xf32, #tpu.memory_space<vmem>>, %arg2: memref<8x1xi32, #tpu.memory_space<vmem>>, %arg3: memref<1x128xf32, #tpu.memory_space<vmem>>) attributes {dimension_semantics = [#tpu.dimension_semantics<parallel>], iteration_bounds = array<i64: 1>, scalar_prefetch = 0 : i64, scratch_operands = 0 : i64, tpu.core_type = #tpu.core_type<tc>, window_params = [{transform_indices = @transform_0, window_bounds = array<i64: 8, 32>}, {transform_indices = @transform_1, window_bounds = array<i64: 8, 1>}, {transform_indices = @transform_2, window_bounds = array<i64: 1, 128>}]} {
    %c0 = arith.constant 0 : index
    %c0_0 = arith.constant 0 : index
    %0 = vector.load %arg1[%c0, %c0_0] : memref<8x32xf32, #tpu.memory_space<vmem>>, vector<8x32xf32>
    %c0_1 = arith.constant 0 : index
    %c0_2 = arith.constant 0 : index
    %1 = vector.load %arg2[%c0_1, %c0_2] : memref<8x1xi32, #tpu.memory_space<vmem>>, vector<8x1xi32>
    %cst = arith.constant dense<0xFF800000> : vector<8xf32>
    %2 = vector.multi_reduction <maximumf>, %0, %cst [1] : vector<8x32xf32> to vector<8xf32>
    %3 = vector.shape_cast %2 : vector<8xf32> to vector<8x1xf32>
    %4 = vector.broadcast %3 : vector<8x1xf32> to vector<8x32xf32>
    %5 = arith.subf %0, %4 : vector<8x32xf32>
    %6 = math.exp %5 : vector<8x32xf32>
    %cst_3 = arith.constant dense<0.000000e+00> : vector<8xf32>
    %7 = vector.multi_reduction <add>, %6, %cst_3 [1] : vector<8x32xf32> to vector<8xf32>
    %8 = vector.shape_cast %7 : vector<8xf32> to vector<8x1xf32>
    %9 = math.log %8 : vector<8x1xf32>
    %10 = tpu.iota {dimensions = array<i32: 1>} : vector<8x32xi32>
    %11 = vector.broadcast %1 : vector<8x1xi32> to vector<8x32xi32>
    %12 = arith.cmpi eq, %10, %11 : vector<8x32xi32>
    %cst_4 = arith.constant 0.000000e+00 : f32
    %13 = vector.broadcast %cst_4 : f32 to vector<8x32xf32>
    %14 = arith.select %12, %0, %13 : vector<8x32xi1>, vector<8x32xf32>
    %cst_5 = arith.constant dense<0.000000e+00> : vector<8xf32>
    %15 = vector.multi_reduction <add>, %14, %cst_5 [1] : vector<8x32xf32> to vector<8xf32>
    %16 = vector.shape_cast %15 : vector<8xf32> to vector<8x1xf32>
    %17 = arith.addf %9, %3 : vector<8x1xf32>
    %18 = arith.subf %17, %16 : vector<8x1xf32>
    %c8_i32 = arith.constant 8 : i32
    %19 = arith.muli %arg0, %c8_i32 : i32
    %20 = tpu.iota {dimensions = array<i32: 0>} : vector<8x1xi32>
    %21 = vector.broadcast %19 : i32 to vector<8x1xi32>
    %22 = arith.addi %21, %20 : vector<8x1xi32>
    %c8_i32_6 = arith.constant 8 : i32
    %23 = vector.broadcast %c8_i32_6 : i32 to vector<8x1xi32>
    %24 = arith.cmpi slt, %22, %23 : vector<8x1xi32>
    %cst_7 = arith.constant 0.000000e+00 : f32
    %25 = vector.broadcast %cst_7 : f32 to vector<8x1xf32>
    %26 = arith.select %24, %18, %25 : vector<8x1xi1>, vector<8x1xf32>
    %27 = vector.shape_cast %26 : vector<8x1xf32> to vector<1x8x1xf32>
    %cst_8 = arith.constant dense<0.000000e+00> : vector<1xf32>
    %28 = vector.multi_reduction <add>, %27, %cst_8 [1, 2] : vector<1x8x1xf32> to vector<1xf32>
    %29 = vector.shape_cast %28 : vector<1xf32> to vector<1x1x1xf32>
    %30 = vector.extract %29[0, 0, 0] : f32 from vector<1x1x1xf32>
    %31 = vector.broadcast %30 : f32 to vector<1x128xf32>
    %c0_9 = arith.constant 0 : index
    %c0_10 = arith.constant 0 : index
    %32 = vector.load %arg3[%c0_9, %c0_10] : memref<1x128xf32, #tpu.memory_space<vmem>>, vector<1x128xf32>
    tpu.vector_store %arg3[%c0_9, %c0_10], %31 {strides = array<i32>} : memref<1x128xf32, #tpu.memory_space<vmem>>, vector<1x128xf32>,
    return
  }
  func.func @transform_0(%arg0: i32) -> (i32, i32) {
    %c0_i32 = arith.constant 0 : i32
    %c0_i32_0 = arith.constant 0 : i32
    return %arg0, %c0_i32 : i32, i32
  }
  func.func @transform_1(%arg0: i32) -> (i32, i32) {
    %c0_i32 = arith.constant 0 : i32
    %c0_i32_0 = arith.constant 0 : i32
    return %arg0, %c0_i32 : i32, i32
  }
  func.func @transform_2(%arg0: i32) -> (i32, i32) {
    %c0_i32 = arith.constant 0 : i32
    %c0_i32_0 = arith.constant 0 : i32
    return %arg0, %c0_i32 : i32, i32
  }
}

</mosaic_0001>

<bundles_post_ra>
// kernel: tpu_custom_call.1
= control target key start
LH: loop header
LB: loop body
LE: loop exit
PB: predicated region body
PF: predicated region fallthrough
CT: control target
= control target key end

     0   :  { %vm14_vm0 = vcmask 261120   ;;  %s143_s0 = inlined_call_operand.vmem [shape: f32[8,32], index: 0, kind: input, shape index: {}]   ;;  %s144_s1 = inlined_call_operand.vmem [shape: s32[8,1], index: 1, kind: input, shape index: {}]   ;;  %s145_s2 = inlined_call_operand.hbm [shape: f32[1,128], index: 2, kind: output, shape index: {}]  }
   0x1   :  { %v12_v0 = vld [vmem:[%s143_s0] sm:$0xff] }
   0x2   :  { %7 = vsyncpa [#allocation3], 0  ;;  %v15_v1 = vsel %vm14_vm0, %v12_v0, -inf  ;;  %v105_v2 = vmov 0   ;;  %v13_v3 = vld [vmem:[%s144_s1] sm:$0xff]  ;;  %v26_v7 = vlaneseq  ;;  %vm45_vm2 = vcmask 7168  }
   0x3   :  { %76 = vset.pattern.permute.xlu0 %v105_v2  ;;  %s106_s0 = smov [#allocation2]  }
   0x4   :  { %16 = vmax.xlane.f32.xlu0 %v15_v1  ;;  %v27_v8 = vand.u32 127, %v26_v7  ;;  %s64_s1 = sshll.u32 %s106_s0, 4  ;;  %s65_s1 = int_to_ptr.vmem [resolvable:$true] %s64_s1 }
   0x5   :  { %s81_s14 = scalar_lea.vmem %s65_s1, 16  ;;  %s85_s15 = scalar_lea.vmem %s65_s1, 32 }
   0x6   :  { %p82_p0 = scmp.ne.s32.totalorder %s65_s1, %s81_s14  ;;  %p86_p1 = scmp.lt.s32.totalorder %s65_s1, %s65_s1 }
   0x7   :  { %p87_p2 = scmp.lt.s32.totalorder %s85_s15, %s81_s14 }
   0x9   :  { %p88_p3 = por %p87_p2, %p86_p1 }
   0xb   :  { %p89_p4 = pnand %p88_p3, %p82_p0 }
  0x1a   :  { %29 = vperm.xlu0 %76, %v13_v3  }
  0x91   :  { %v17_v4 = vpop.xlane.xlu0 %16 }
  0x92   :  { %v18_v5 = vsub.f32 %v12_v0, %v17_v4 }
  0x94   :  { %v19_v6 = vmul.f32 1.442695, %v18_v5 }
  0x96   :  { %77 = vpow2.f32 %v19_v6 }
  0x99   :  { %v30_v9 = vpop.permute.xlu0 %29 }
  0x9a   :  { %vm31_vm1 = vcmp.eq.s32.totalorder %v27_v8, %v30_v9 }
  0x9b   :  { %v32_v11 = vsel %vm31_vm1, %v12_v0, 0.0 }
  0x9c   :  { %v33_v13 = vsel %vm14_vm0, %v32_v11, 0.0 }
  0xa0   :  { %v78_v10 = vpop.eup %77 }
  0xa1   :  { %v21_v12 = vsel %vm14_vm0, %v78_v10, 0.0 }
  0xa2   :  { %22 = vadd.xlane.f32.xlu1 %v21_v12 }
  0xa6   :  { %34 = vadd.xlane.f32.xlu1 %v33_v13 }
 0x12f   :  { %v23_v14 = vpop.xlane.xlu1 %22 }
 0x130   :  { %79 = vlog2.f32 %v23_v14 }
 0x133   :  { %v35_v17 = vpop.xlane.xlu1 %34 }
 0x13a   :  { %v80_v15 = vpop.eup %79 }
 0x13b   :  { %v25_v16 = vmul.f32 0.6931472, %v80_v15 }
 0x13d   :  { %v36_v18 = vadd.f32 %v25_v16, %v17_v4 }
 0x13f   :  { %v37_v19 = vsub.f32 %v36_v18, %v35_v17 }
 0x141   :  { %v46_v20 = vsel %vm45_vm2, %v37_v19, 0.0 }
 0x142   :  { %47 = vadd.xlane.f32.xlu1 %v46_v20 }
 0x1cf   :  { %v48_v21 = vpop.xlane.xlu1 %47 }
 0x1d0   :  { %v49_v22 = vrot.slane %v48_v21, 4 }
 0x1d2   :  { %v50_v23 = vadd.f32 %v49_v22, %v48_v21 }
 0x1d4   :  { %v51_v24 = vrot.slane %v50_v23, 2 }
 0x1d6   :  { %v52_v25 = vadd.f32 %v51_v24, %v50_v23 }
 0x1d8   :  { %v53_v26 = vrot.slane %v52_v25, 1 }
 0x1da   :  { %v54_v27 = vadd.f32 %v53_v26, %v52_v25 }
 0x1dc   :  { %72 = vpush %v54_v27 }
 0x20d   :  { %s73_s13 = spop %72 }
 0x20e   :  { %v56_v28 = vstv %s73_s13 }
 0x20f   :  { %57 = vst [vmem:[#allocation2] sm:$0x1] %v56_v28 }
 0x210   :  { %92 = shalt.err (!%p89_p4)
}
 0x211   :  { %s93_s18 = scalar_lea.hbm %s145_s2, 16 }
 0x212   :  { %p94_p5 = scmp.ne.s32.totalorder %s145_s2, %s93_s18  ;;  %p97_p6 = scmp.lt.u32.totalorder %s93_s18, %s145_s2 }
 0x214   :  { %p99_p7 = pnand %p97_p6, %p94_p5 }
 0x216   :  { %102 = shalt.err (!%p99_p7)
}
 0x217   :  { %67 = dma.vmem_to_hbm [thread:$0]  %s65_s1, 16, %s145_s2, [#allocation3]  }
 0x218   :  { %103 = dma.done.wait [#allocation3], 16  }
 0x219   :  { %104 = vsyncadd [#allocation3], 4294967280 }
 0x21a   :  { %71 = vsyncpa [#allocation3], 1 }

</bundles_post_ra>
